<compile_context>
chip_gen: v6e
topology: v6e:2x2x1
jax: 0.10.0
libtpu: 0.0.40
codegen_flags: <defaults>
</compile_context>

<pallas_src>
import functools

import jax
import jax.numpy as jnp
from jax.experimental import pallas as pl
from jax.experimental.pallas import tpu as pltpu


# -----------------------------------------------------------------------------
# Fused DCN-matmul + GroupNorm Pallas kernel
# -----------------------------------------------------------------------------
def _dcn_gn_kernel(p_ref, w_ref, ga_ref, g_ref, b_ref, o_ref, sum_ref, sq_ref,
                   *, inv_count):
    """One (batch n, channel-half c, m-tile) grid step.

    p_ref : (1, tm, K)   bf16  pre-sampled, mask-modulated patches tile (streamed)
    w_ref : (K, tc)      bf16  conv weight slice (im2col layout, resident)
    ga_ref: (tc, tc)     f32   group-averaging matrix block (resident)
    g_ref : (1, tc)      f32   GN gamma slice
    b_ref : (1, tc)      f32   GN beta slice
    o_ref : (1, Mp, tc)  bf16  output block, resident in VMEM across the m axis
    sum_ref, sq_ref: (1, tc) f32 scratch accumulators (per-channel sum / sum sq)
    inv_count: 1 / (true Ho*Wo), baked in as a Python float.
    """
    m = pl.program_id(2)
    n_m = pl.num_programs(2)
    tm = p_ref.shape[1]

    @pl.when(m == 0)
    def _init():
        sum_ref[...] = jnp.zeros_like(sum_ref)
        sq_ref[...] = jnp.zeros_like(sq_ref)

    # bf16 x bf16 MXU matmul with f32 accumulation.
    y = jnp.dot(p_ref[0], w_ref[...], preferred_element_type=jnp.float32)  # (tm, tc)

    # Per-channel first/second moments in f32 (zero-padded rows contribute 0).
    sum_ref[...] = sum_ref[...] + jnp.sum(y, axis=0, keepdims=True)
    sq_ref[...] = sq_ref[...] + jnp.sum(y * y, axis=0, keepdims=True)

    # Write this tile into the VMEM-resident bf16 output block.
    row = pl.multiple_of(m * tm, tm)
    o_ref[0, pl.ds(row, tm), :] = y.astype(o_ref.dtype)

    @pl.when(m == n_m - 1)
    def _finalize():
        mean_c = sum_ref[...] * inv_count                 # (1, tc) per-channel mean
        msq_c = sq_ref[...] * inv_count                   # (1, tc) per-channel E[y^2]
        # Group statistics via the (tc, tc) averaging matrix (block-diagonal in
        # GN groups -> no in-kernel lane-dim reshapes).
        mu = jnp.dot(mean_c, ga_ref[...], preferred_element_type=jnp.float32)
        ms = jnp.dot(msq_c, ga_ref[...], preferred_element_type=jnp.float32)
        var = jnp.maximum(ms - mu * mu, 0.0)              # guard f32 cancellation
        scale = jax.lax.rsqrt(var + 1e-5) * g_ref[...]    # (1, tc)
        shift = b_ref[...] - mu * scale

        n_tiles = o_ref.shape[1] // tm                    # static

        def apply_tile(i, carry):
            r = pl.multiple_of(i * tm, tm)
            blk = o_ref[0, pl.ds(r, tm), :].astype(jnp.float32)
            o_ref[0, pl.ds(r, tm), :] = (blk * scale + shift).astype(o_ref.dtype)
            return carry

        jax.lax.fori_loop(0, n_tiles, apply_tile, 0)


# -----------------------------------------------------------------------------
# Tiling helpers
# -----------------------------------------------------------------------------
def _round_up(x, m):
    return ((x + m - 1) // m) * m


def _pick_tm(M, block_m):
    """m-tile: multiple of 16 (bf16 sublane packing), <= block_m, >= padded M if tiny."""
    block_m = max(16, (block_m // 16) * 16)
    return min(block_m, _round_up(M, 16))


def _pick_tc(Co, Cop, group_size):
    """Channel tile: split padded channels into two lane-dense halves of whole GN
    groups (keeps both v7x TensorCores busy via a 'parallel' grid axis); otherwise
    keep all (padded) channels in a single tile."""
    half = Cop // 2
    if Cop == Co and Cop % 2 == 0 and half % 128 == 0 and half % group_size == 0:
        return half
    return Cop


def _vmem_limit_bytes(tm, K, tc, Mp):
    need = (2 * (tm * K * 2 + K * tc * 2 + tc * tc * 4 + 2 * tc * 4)   # dbl-buffered inputs
            + 2 * Mp * tc * 2                                          # resident bf16 output (x2 across n/c)
            + 2 * tc * 4)                                              # f32 sum/sq scratch
    try:
        cap = int(pltpu.get_tpu_info().vmem_capacity_bytes)
    except Exception:
        cap = 64 * 1024 * 1024                                         # conservative (v7x)
    return int(min(max(need + (4 << 20), 8 << 20), int(0.85 * cap)))


# -----------------------------------------------------------------------------
# Wrapper: pad M / Co, build grid, call the kernel
# -----------------------------------------------------------------------------
def pallas_dcn_gn(patches_bf16, w_bf16, group_avg, gamma, beta, *,
                  group_size, block_m=512):
    N, M, K = patches_bf16.shape
    Co = w_bf16.shape[1]

    # --- Channel padding to a lane-dense multiple of 128 (dead lanes: zero weight,
    #     zero gamma/beta, zero group-avg rows/cols -> output 0, sliced off). ----
    Cop = _round_up(Co, 128)
    if Cop != Co:
        pc = Cop - Co
        w_bf16 = jnp.pad(w_bf16, ((0, 0), (0, pc)))
        group_avg = jnp.pad(group_avg, ((0, pc), (0, pc)))
        gamma = jnp.pad(gamma, ((0, 0), (0, pc)))
        beta = jnp.pad(beta, ((0, 0), (0, pc)))
    tc = _pick_tc(Co, Cop, group_size)
    n_c = Cop // tc

    # --- Spatial (M) padding so the m axis always tiles (DyHead spatial sizes are
    #     generally not multiples of 8); padded rows are zero patches. ------------
    tm = _pick_tm(M, block_m)
    Mp = _round_up(M, tm)
    if Mp != M:
        patches_bf16 = jnp.pad(patches_bf16, ((0, 0), (0, Mp - M), (0, 0)))
    n_m = Mp // tm

    vmem_limit = _vmem_limit_bytes(tm, K, tc, Mp)
    # NOTE: if the resident output still overflows VMEM for extreme Mp on v7x, set
    # pipeline_mode=pl.Buffered(1) on out_specs (single output buffer across n/c).

    grid_spec = pltpu.PrefetchScalarGridSpec(
        num_scalar_prefetch=0,
        grid=(N, n_c, n_m),
        in_specs=[
            pl.BlockSpec((1, tm, K), lambda n, c, m: (n, m, 0)),   # streamed patches
            pl.BlockSpec((K, tc), lambda n, c, m: (0, c)),         # weight slice
            pl.BlockSpec((tc, tc), lambda n, c, m: (c, c)),        # group-avg block
            pl.BlockSpec((1, tc), lambda n, c, m: (0, c)),         # gamma slice
            pl.BlockSpec((1, tc), lambda n, c, m: (0, c)),         # beta slice
        ],
        out_specs=pl.BlockSpec((1, Mp, tc), lambda n, c, m: (n, 0, c)),  # resident over m
        scratch_shapes=[
            pltpu.VMEM((1, tc), jnp.float32),
            pltpu.VMEM((1, tc), jnp.float32),
        ],
    )

    cost = pl.CostEstimate(
        flops=2 * N * Mp * K * Cop,
        transcendentals=N * Cop,
        bytes_accessed=(N * Mp * K * 2 + K * Cop * 2 + Cop * Cop * 4
                        + 4 * Cop * 4 + N * Mp * Cop * 2),
    )

    out = pl.pallas_call(
        functools.partial(_dcn_gn_kernel, inv_count=1.0 / float(M)),
        out_shape=jax.ShapeDtypeStruct((N, Mp, Cop), jnp.bfloat16),
        grid_spec=grid_spec,
        compiler_params=pltpu.CompilerParams(
            dimension_semantics=("parallel", "parallel", "arbitrary"),
            vmem_limit_bytes=vmem_limit,
        ),
        cost_estimate=cost,
    )(patches_bf16, w_bf16, group_avg, gamma, beta)

    return out[:, :M, :Co]


# -----------------------------------------------------------------------------
# JAX glue: deformable bilinear sampling (data-dependent gather)
# -----------------------------------------------------------------------------
def deform_sample(x, offset, mask, stride, out_dtype=jnp.float32):
    """Bilinear sampling for ModulatedDeformConv2d (k=3, pad=1, dilation=1).

    x:      (N, Hin, Win, Cin)
    offset: (N, Ho, Wo, 18)  interleaved (dy, dx) per kernel point (mmcv ordering)
    mask:   (N, Ho, Wo, 9)
    returns (N, Ho*Wo, 9*Cin) mask-modulated patches in out_dtype.
    """
    N, Hin, Win, Cin = x.shape
    _, Ho, Wo, _ = offset.shape
    ky, kx = jnp.meshgrid(jnp.arange(3), jnp.arange(3), indexing="ij")
    ky = ky.reshape(9).astype(jnp.float32)
    kx = kx.reshape(9).astype(jnp.float32)
    h0 = (jnp.arange(Ho) * stride - 1).astype(jnp.float32)   # pad = 1
    w0 = (jnp.arange(Wo) * stride - 1).astype(jnp.float32)
    dy = offset[..., 0::2]                                    # (N, Ho, Wo, 9)
    dx = offset[..., 1::2]
    py = h0[None, :, None, None] + ky[None, None, None, :] + dy
    px = w0[None, None, :, None] + kx[None, None, None, :] + dx

    y0 = jnp.floor(py)
    x0 = jnp.floor(px)
    y1 = y0 + 1.0
    x1 = x0 + 1.0
    wy1 = py - y0
    wy0 = 1.0 - wy1
    wx1 = px - x0
    wx0 = 1.0 - wx1

    bidx = jnp.arange(N)[:, None, None, None]

    def gather(yy, xx):
        valid = (yy >= 0) & (yy <= Hin - 1) & (xx >= 0) & (xx <= Win - 1)
        yc = jnp.clip(yy, 0, Hin - 1).astype(jnp.int32)
        xc = jnp.clip(xx, 0, Win - 1).astype(jnp.int32)
        vals = x[bidx, yc, xc, :]                              # (N, Ho, Wo, 9, Cin)
        return vals * valid[..., None].astype(x.dtype)

    v = (gather(y0, x0) * (wy0 * wx0)[..., None]
         + gather(y0, x1) * (wy0 * wx1)[..., None]
         + gather(y1, x0) * (wy1 * wx0)[..., None]
         + gather(y1, x1) * (wy1 * wx1)[..., None])
    v = v * mask[..., :, None]
    return v.reshape(N, Ho * Wo, 9 * Cin).astype(out_dtype)


# -----------------------------------------------------------------------------
# DyDCNv2 forward + parameters + pure-JAX reference
# -----------------------------------------------------------------------------
def init_params(key, cin, cout, groups=16):
    assert cout % groups == 0
    k_w, k_g, k_b = jax.random.split(key, 3)
    w = 0.01 * jax.random.normal(k_w, (cout, cin, 3, 3), jnp.float32)
    # (Cout, Cin, kh, kw) -> (kh*kw*Cin, Cout), k-major / cin-minor == patch layout.
    w_mat = jnp.transpose(w, (2, 3, 1, 0)).reshape(9 * cin, cout)
    cg = cout // groups
    gid = jnp.arange(cout) // cg
    gn_A = (gid[:, None] == gid[None, :]).astype(jnp.float32) / cg
    gamma = 1.0 + 0.1 * jax.random.normal(k_g, (1, cout), jnp.float32)
    beta = 0.1 * jax.random.normal(k_b, (1, cout), jnp.float32)
    return {
        "groups": groups,
        "w_bf16": w_mat.astype(jnp.bfloat16),
        "gn_A": gn_A,
        "gamma": gamma,
        "beta": beta,
    }


@functools.partial(jax.jit, static_argnames=("stride", "groups", "block_m"))
def dydcnv2_forward(x, offset, mask, w_bf16, gn_A, gamma, beta, *,
                    stride=1, groups=16, block_m=512):
    N = x.shape[0]
    Ho, Wo = offset.shape[1], offset.shape[2]
    Co = w_bf16.shape[1]
    # bf16 patches: halves the dominant HBM stream into the kernel (precision
    # contract: bf16 MXU feeds, f32 accumulation and GN statistics).
    patches = deform_sample(x, offset, mask, stride, out_dtype=jnp.bfloat16)
    y = pallas_dcn_gn(patches, w_bf16, gn_A, gamma, beta,
                      group_size=Co // groups, block_m=block_m)
    return y.reshape(N, Ho, Wo, Co)


def reference_forward(x, offset, mask, params, *, stride=1, eps=1e-5):
    """Pure-JAX reference: deform-conv matmul (f32) + GroupNorm."""
    N = x.shape[0]
    Ho, Wo = offset.shape[1], offset.shape[2]
    w = params["w_bf16"].astype(jnp.float32)
    C = w.shape[1]
    G = params["groups"]
    patches = deform_sample(x, offset, mask, stride)
    y = patches @ w                                           # (N, M, C)
    yg = y.reshape(N, Ho * Wo, G, C // G)
    mu = yg.mean(axis=(1, 3), keepdims=True)
    var = yg.var(axis=(1, 3), keepdims=True)
    yn = ((yg - mu) * jax.lax.rsqrt(var + eps)).reshape(N, Ho * Wo, C)
    return (yn * params["gamma"] + params["beta"]).reshape(N, Ho, Wo, C)


# -----------------------------------------------------------------------------
if __name__ == "__main__":
    key = jax.random.PRNGKey(0)
    kp, kx, ko, km = jax.random.split(key, 4)

    N, Cin, Cout = 2, 32, 32                     # Cout divisible by GN groups=16
    params = init_params(kp, Cin, Cout)

    # (stride, H, W): stride 1 & 2 as used in DyHead, plus a 15x15 case whose
    # M = 225 is NOT a multiple of 8/16 to exercise the spatial-padding path.
    cases = [(1, 16, 16), (2, 16, 16), (1, 15, 15)]
    for stride, H, W in cases:
        kxi = jax.random.fold_in(kx, H * 1000 + stride)
        x = jax.random.normal(kxi, (N, H, W, Cin), jnp.float32)
        Ho = (H + 2 - 3) // stride + 1
        Wo = (W + 2 - 3) // stride + 1
        offset = 0.5 * jax.random.normal(ko, (N, Ho, Wo, 18), jnp.float32)
        mask = jax.nn.sigmoid(jax.random.normal(km, (N, Ho, Wo, 9), jnp.float32))

        out = dydcnv2_forward(x, offset, mask, params["w_bf16"], params["gn_A"],
                              params["gamma"], params["beta"],
                              stride=stride, groups=params["groups"],
                              block_m=64)          # small block_m -> several pipeline
        out = jax.block_until_ready(out)           # steps at toy size

        ref = reference_forward(x, offset, mask, params, stride=stride)
        out_f32 = out.astype(jnp.float32)
        assert out.shape == (N, Ho, Wo, Cout)
        assert bool(jnp.all(jnp.isfinite(out_f32)))
        err = float(jnp.max(jnp.abs(out_f32 - ref)))
        assert bool(jnp.allclose(out_f32, ref, rtol=5e-2, atol=5e-2)), (
            "stride=%d H=%d W=%d max abs err = %f" % (stride, H, W, err))

    print("KERNEL_OK")
</pallas_src>

<mosaic_0001>
module attributes {stable_mosaic.version = 11 : i64} {
  func.func @_dcn_gn_kernel(%arg0: i32, %arg1: i32, %arg2: i32, %arg3: memref<1x64x288xbf16, #tpu.memory_space<vmem>>, %arg4: memref<288x128xbf16, #tpu.memory_space<vmem>>, %arg5: memref<128x128xf32, #tpu.memory_space<vmem>>, %arg6: memref<1x128xf32, #tpu.memory_space<vmem>>, %arg7: memref<1x128xf32, #tpu.memory_space<vmem>>, %arg8: memref<1x256x128xbf16, #tpu.memory_space<vmem>>, %arg9: memref<1x128xf32, #tpu.memory_space<vmem>>, %arg10: memref<1x128xf32, #tpu.memory_space<vmem>>) attributes {dimension_semantics = [#tpu.dimension_semantics<parallel>, #tpu.dimension_semantics<parallel>, #tpu.dimension_semantics<arbitrary>], iteration_bounds = array<i64: 2, 1, 4>, scalar_prefetch = 0 : i64, scratch_operands = 2 : i64, tpu.core_type = #tpu.core_type<tc>, window_params = [{transform_indices = @transform_0, window_bounds = array<i64: 1, 64, 288>}, {transform_indices = @transform_1, window_bounds = array<i64: 288, 128>}, {transform_indices = @transform_2, window_bounds = array<i64: 128, 128>}, {transform_indices = @transform_3, window_bounds = array<i64: 1, 128>}, {transform_indices = @transform_4, window_bounds = array<i64: 1, 128>}, {transform_indices = @transform_5, window_bounds = array<i64: 1, 256, 128>}]} {
    %c0_i32 = arith.constant 0 : i32
    %0 = arith.cmpi eq, %arg2, %c0_i32 : i32
    %1 = arith.extui %0 : i1 to i32
    %c0_i32_0 = arith.constant 0 : i32
    %2 = arith.cmpi ne, %1, %c0_i32_0 : i32
    scf.if %2 {
      %cst_18 = arith.constant 0.000000e+00 : f32
      %28 = vector.broadcast %cst_18 : f32 to vector<1x128xf32>
      %c0_19 = arith.constant 0 : index
      %c0_20 = arith.constant 0 : index
      %29 = vector.load %arg9[%c0_19, %c0_20] : memref<1x128xf32, #tpu.memory_space<vmem>>, vector<1x128xf32>
      tpu.vector_store %arg9[%c0_19, %c0_20], %28 {strides = array<i32>} : memref<1x128xf32, #tpu.memory_space<vmem>>, vector<1x128xf32>,
      %cst_21 = arith.constant 0.000000e+00 : f32
      %30 = vector.broadcast %cst_21 : f32 to vector<1x128xf32>
      %c0_22 = arith.constant 0 : index
      %c0_23 = arith.constant 0 : index
      %31 = vector.load %arg10[%c0_22, %c0_23] : memref<1x128xf32, #tpu.memory_space<vmem>>, vector<1x128xf32>
      tpu.vector_store %arg10[%c0_22, %c0_23], %30 {strides = array<i32>} : memref<1x128xf32, #tpu.memory_space<vmem>>, vector<1x128xf32>,
    } else {
    }
    %c0 = arith.constant 0 : index
    %c0_1 = arith.constant 0 : index
    %c0_2 = arith.constant 0 : index
    %3 = vector.load %arg3[%c0, %c0_1, %c0_2] : memref<1x64x288xbf16, #tpu.memory_space<vmem>>, vector<1x64x288xbf16>
    %4 = vector.shape_cast %3 : vector<1x64x288xbf16> to vector<64x288xbf16>
    %c0_3 = arith.constant 0 : index
    %c0_4 = arith.constant 0 : index
    %5 = vector.load %arg4[%c0_3, %c0_4] : memref<288x128xbf16, #tpu.memory_space<vmem>>, vector<288x128xbf16>
    %cst = arith.constant dense<0.000000e+00> : vector<64x128xf32>
    %6 = tpu.matmul %4, %5, %cst {dimension_numbers = #tpu.dot_dimension_numbers<[1], [0], [0], [1], [0, 0, 1, 1], [], []>} : vector<64x288xbf16>, vector<288x128xbf16>, vector<64x128xf32> -> vector<64x128xf32>
    %c0_5 = arith.constant 0 : index
    %c0_6 = arith.constant 0 : index
    %7 = vector.load %arg9[%c0_5, %c0_6] : memref<1x128xf32, #tpu.memory_space<vmem>>, vector<1x128xf32>
    %cst_7 = arith.constant dense<0.000000e+00> : vector<128xf32>
    %8 = vector.multi_reduction <add>, %6, %cst_7 [0] : vector<64x128xf32> to vector<128xf32>
    %9 = vector.shape_cast %8 : vector<128xf32> to vector<1x128xf32>
    %10 = arith.addf %7, %9 : vector<1x128xf32>
    %c0_8 = arith.constant 0 : index
    %c0_9 = arith.constant 0 : index
    %11 = vector.load %arg9[%c0_8, %c0_9] : memref<1x128xf32, #tpu.memory_space<vmem>>, vector<1x128xf32>
    tpu.vector_store %arg9[%c0_8, %c0_9], %10 {strides = array<i32>} : memref<1x128xf32, #tpu.memory_space<vmem>>, vector<1x128xf32>,
    %c0_10 = arith.constant 0 : index
    %c0_11 = arith.constant 0 : index
    %12 = vector.load %arg10[%c0_10, %c0_11] : memref<1x128xf32, #tpu.memory_space<vmem>>, vector<1x128xf32>
    %13 = arith.mulf %6, %6 : vector<64x128xf32>
    %cst_12 = arith.constant dense<0.000000e+00> : vector<128xf32>
    %14 = vector.multi_reduction <add>, %13, %cst_12 [0] : vector<64x128xf32> to vector<128xf32>
    %15 = vector.shape_cast %14 : vector<128xf32> to vector<1x128xf32>
    %16 = arith.addf %12, %15 : vector<1x128xf32>
    %c0_13 = arith.constant 0 : index
    %c0_14 = arith.constant 0 : index
    %17 = vector.load %arg10[%c0_13, %c0_14] : memref<1x128xf32, #tpu.memory_space<vmem>>, vector<1x128xf32>
    tpu.vector_store %arg10[%c0_13, %c0_14], %16 {strides = array<i32>} : memref<1x128xf32, #tpu.memory_space<vmem>>, vector<1x128xf32>,
    %c64_i32 = arith.constant 64 : i32
    %18 = arith.muli %arg2, %c64_i32 : i32
    %19 = tpu.assume_multiple %18, 64 : i32
    %20 = arith.truncf %6 : vector<64x128xf32> to vector<64x128xbf16>
    %c0_15 = arith.constant 0 : index
    %21 = arith.index_cast %19 : i32 to index
    %c0_16 = arith.constant 0 : index
    %22 = vector.load %arg8[%c0_15, %21, %c0_16] : memref<1x256x128xbf16, #tpu.memory_space<vmem>>, vector<1x64x128xbf16>
    %23 = vector.shape_cast %22 : vector<1x64x128xbf16> to vector<64x128xbf16>
    %24 = vector.shape_cast %20 : vector<64x128xbf16> to vector<1x64x128xbf16>
    tpu.vector_store %arg8[%c0_15, %21, %c0_16], %24 {strides = array<i32>} : memref<1x256x128xbf16, #tpu.memory_space<vmem>>, vector<1x64x128xbf16>,
    %c3_i32 = arith.constant 3 : i32
    %25 = arith.cmpi eq, %arg2, %c3_i32 : i32
    %26 = arith.extui %25 : i1 to i32
    %c0_i32_17 = arith.constant 0 : i32
    %27 = arith.cmpi ne, %26, %c0_i32_17 : i32
    scf.if %27 {
      %c0_18 = arith.constant 0 : index
      %c0_19 = arith.constant 0 : index
      %28 = vector.load %arg9[%c0_18, %c0_19] : memref<1x128xf32, #tpu.memory_space<vmem>>, vector<1x128xf32>
      %cst_20 = arith.constant 3.906250e-03 : f32
      %29 = vector.broadcast %cst_20 : f32 to vector<1x128xf32>
      %30 = arith.mulf %28, %29 : vector<1x128xf32>
      %c0_21 = arith.constant 0 : index
      %c0_22 = arith.constant 0 : index
      %31 = vector.load %arg10[%c0_21, %c0_22] : memref<1x128xf32, #tpu.memory_space<vmem>>, vector<1x128xf32>
      %cst_23 = arith.constant 3.906250e-03 : f32
      %32 = vector.broadcast %cst_23 : f32 to vector<1x128xf32>
      %33 = arith.mulf %31, %32 : vector<1x128xf32>
      %c0_24 = arith.constant 0 : index
      %c0_25 = arith.constant 0 : index
      %34 = vector.load %arg5[%c0_24, %c0_25] : memref<128x128xf32, #tpu.memory_space<vmem>>, vector<128x128xf32>
      %cst_26 = arith.constant dense<0.000000e+00> : vector<1x128xf32>
      %35 = tpu.matmul %30, %34, %cst_26 {dimension_numbers = #tpu.dot_dimension_numbers<[1], [0], [0], [1], [0, 0, 1, 1], [], []>} : vector<1x128xf32>, vector<128x128xf32>, vector<1x128xf32> -> vector<1x128xf32>
      %c0_27 = arith.constant 0 : index
      %c0_28 = arith.constant 0 : index
      %36 = vector.load %arg5[%c0_27, %c0_28] : memref<128x128xf32, #tpu.memory_space<vmem>>, vector<128x128xf32>
      %cst_29 = arith.constant dense<0.000000e+00> : vector<1x128xf32>
      %37 = tpu.matmul %33, %36, %cst_29 {dimension_numbers = #tpu.dot_dimension_numbers<[1], [0], [0], [1], [0, 0, 1, 1], [], []>} : vector<1x128xf32>, vector<128x128xf32>, vector<1x128xf32> -> vector<1x128xf32>
      %38 = arith.mulf %35, %35 : vector<1x128xf32>
      %39 = arith.subf %37, %38 : vector<1x128xf32>
      %cst_30 = arith.constant 0.000000e+00 : f32
      %40 = vector.broadcast %cst_30 : f32 to vector<1x128xf32>
      %41 = arith.maximumf %39, %40 : vector<1x128xf32>
      %cst_31 = arith.constant 9.99999974E-6 : f32
      %42 = vector.broadcast %cst_31 : f32 to vector<1x128xf32>
      %43 = arith.addf %41, %42 : vector<1x128xf32>
      %44 = math.rsqrt %43 : vector<1x128xf32>
      %c0_32 = arith.constant 0 : index
      %c0_33 = arith.constant 0 : index
      %45 = vector.load %arg6[%c0_32, %c0_33] : memref<1x128xf32, #tpu.memory_space<vmem>>, vector<1x128xf32>
      %46 = arith.mulf %44, %45 : vector<1x128xf32>
      %c0_34 = arith.constant 0 : index
      %c0_35 = arith.constant 0 : index
      %47 = vector.load %arg7[%c0_34, %c0_35] : memref<1x128xf32, #tpu.memory_space<vmem>>, vector<1x128xf32>
      %48 = arith.mulf %35, %46 : vector<1x128xf32>
      %49 = arith.subf %47, %48 : vector<1x128xf32>
      %c0_i32_36 = arith.constant 0 : i32
      %c4_i32 = arith.constant 4 : i32
      %50 = arith.addi %c0_i32_36, %c4_i32 : i32
      %c1_i32 = arith.constant 1 : i32
      scf.for %arg11 = %c0_i32_36 to %50 step %c1_i32  : i32 {
        %c64_i32_38 = arith.constant 64 : i32
        %51 = arith.muli %arg11, %c64_i32_38 : i32
        %52 = tpu.assume_multiple %51, 64 : i32
        %c0_39 = arith.constant 0 : index
        %53 = arith.index_cast %52 : i32 to index
        %c0_40 = arith.constant 0 : index
        %54 = vector.load %arg8[%c0_39, %53, %c0_40] : memref<1x256x128xbf16, #tpu.memory_space<vmem>>, vector<1x64x128xbf16>
        %55 = vector.shape_cast %54 : vector<1x64x128xbf16> to vector<64x128xbf16>
        %56 = arith.extf %55 : vector<64x128xbf16> to vector<64x128xf32>
        %57 = vector.broadcast %46 : vector<1x128xf32> to vector<64x128xf32>
        %58 = arith.mulf %56, %57 : vector<64x128xf32>
        %59 = vector.broadcast %49 : vector<1x128xf32> to vector<64x128xf32>
        %60 = arith.addf %58, %59 : vector<64x128xf32>
        %61 = arith.truncf %60 : vector<64x128xf32> to vector<64x128xbf16>
        %c0_41 = arith.constant 0 : index
        %62 = arith.index_cast %52 : i32 to index
        %c0_42 = arith.constant 0 : index
        %63 = vector.load %arg8[%c0_41, %62, %c0_42] : memref<1x256x128xbf16, #tpu.memory_space<vmem>>, vector<1x64x128xbf16>
        %64 = vector.shape_cast %63 : vector<1x64x128xbf16> to vector<64x128xbf16>
        %65 = vector.shape_cast %61 : vector<64x128xbf16> to vector<1x64x128xbf16>
        tpu.vector_store %arg8[%c0_41, %62, %c0_42], %65 {strides = array<i32>} : memref<1x256x128xbf16, #tpu.memory_space<vmem>>, vector<1x64x128xbf16>,
      }
      %c4_i32_37 = arith.constant 4 : i32
    } else {
    }
    return
  }
  func.func @transform_0(%arg0: i32, %arg1: i32, %arg2: i32) -> (i32, i32, i32) {
    %c0_i32 = arith.constant 0 : i32
    %c0_i32_0 = arith.constant 0 : i32
    return %arg0, %arg2, %c0_i32 : i32, i32, i32
  }
  func.func @transform_1(%arg0: i32, %arg1: i32, %arg2: i32) -> (i32, i32) {
    %c0_i32 = arith.constant 0 : i32
    %c0_i32_0 = arith.constant 0 : i32
    return %c0_i32, %arg1 : i32, i32
  }
  func.func @transform_2(%arg0: i32, %arg1: i32, %arg2: i32) -> (i32, i32) {
    %c0_i32 = arith.constant 0 : i32
    return %arg1, %arg1 : i32, i32
  }
  func.func @transform_3(%arg0: i32, %arg1: i32, %arg2: i32) -> (i32, i32) {
    %c0_i32 = arith.constant 0 : i32
    %c0_i32_0 = arith.constant 0 : i32
    return %c0_i32, %arg1 : i32, i32
  }
  func.func @transform_4(%arg0: i32, %arg1: i32, %arg2: i32) -> (i32, i32) {
    %c0_i32 = arith.constant 0 : i32
    %c0_i32_0 = arith.constant 0 : i32
    return %c0_i32, %arg1 : i32, i32
  }
  func.func @transform_5(%arg0: i32, %arg1: i32, %arg2: i32) -> (i32, i32, i32) {
    %c0_i32 = arith.constant 0 : i32
    %c0_i32_0 = arith.constant 0 : i32
    return %arg0, %c0_i32, %arg1 : i32, i32, i32
  }
}

</mosaic_0001>

<bundles_post_ra>
// kernel: dydcnv2_forward.1
= control target key start
LH: loop header
LB: loop body
LE: loop exit
PB: predicated region body
PF: predicated region fallthrough
CT: control target
= control target key end

     0   :  { %10 = vsyncpa [#allocation5], 0  ;;  %s2156_s0 = inlined_call_operand.vmem [shape: bf16[2,256,288], index: 0, kind: input, shape index: {}]   ;;  %s2157_s1 = inlined_call_operand.vmem [shape: bf16[288,128], index: 1, kind: input, shape index: {}]   ;;  %s2158_s2 = inlined_call_operand.vmem [shape: f32[128,128], index: 2, kind: input, shape index: {}]   ;;  %s2159_s3 = inlined_call_operand.vmem [shape: f32[1,128], index: 3, kind: input, shape index: {}]   ;;  %s2160_s4 = inlined_call_operand.vmem [shape: f32[1,128], index: 4, kind: input, shape index: {}]   ;;  %s2161_s5 = inlined_call_operand.hbm [shape: bf16[2,256,128], index: 5, kind: output, shape index: {}]  }
   0x1   :  { %12 = vsyncpa [#allocation5 + $0x1], 0  ;;  %s1824_s18 = smov 0   ;;  %s1826_s19 = smov 0  }
   0x2   :  { %s1828_s20 = smov 0   ;;  %s1830_s21 = smov 0  }
   0x3   :  { %s1832_s22 = smov 0   ;;  %s1834_s23 = smov 0  }
   0x4   :  { %s1836_s24 = smov 0   ;;  %s1838_s25 = smov 0  }
   0x5 LB: > { %s1231_s26 = sadd.s32 4294967295, %s1782_s25   ;;  %s1232_s27 = sadd.s32 4294967294, %s1782_s25   ;;  %s1782_s25 = sphi %s1838_s25, %s18_s25   ;;  %s1778_s24 = sphi %s1836_s24, %s2175_s24   ;;  %s1774_s23 = sphi %s1834_s23, %s2174_s23   ;;  %s1770_s22 = sphi %s1832_s22, %s2173_s22   ;;  %s1766_s21 = sphi %s1830_s21, %s2172_s21   ;;  %s1762_s20 = sphi %s1828_s20, %s2171_s20   ;;  %s1758_s19 = sphi %s1826_s19, %s2170_s19   ;;  %s1754_s18 = sphi %s1824_s18, %s2169_s18  }
   0x6   : > { %s30_s28 = sadd.s32 1, %s1774_s23  ;;  %s37_s29 = sadd.s32 1, %s1778_s24 }
   0x7   : > { %p31_p0 = scmp.ge.s32.totalorder %s30_s28, 4  ;;  %p190_p1 = scmp.ne.s32.totalorder %s1762_s20, %s1758_s19 }
   0x8   : > { %p191_p2 = scmp.eq.s32.totalorder %s1231_s26, 7  ;;  %p196_p4 = scmp.ne.s32.totalorder %s1758_s19, %s1754_s18 }
   0x9   : > { %s2177_s28 = smov (%p31_p0, %s30_s28), 0  ;;  %s2179_s29 = smov (!%p31_p0, %s37_s29), %s1778_s24 }
   0xa   : > { %p1873_p3 = por %p191_p2, %p190_p1  ;;  %p39_p5 = scmp.ge.s32.totalorder %s2179_s29, 2 }
   0xb   : > { %p197_p6 = scmp.eq.s32.totalorder %s1232_s27, 7  ;;  %p1239_p7 = scmp.ge.s32.totalorder %s1782_s25, 1 }
   0xc   : > { %p260_p8 = scmp.lt.s32.totalorder %s1782_s25, 9  ;;  %s2181_s29 = smov (%p39_p5, %s2179_s29), 0 }
   0xd   : > { %2165 = sst [smem:[#allocation7_spill]] %s2181_s29  ;;  %p1883_p9 = por %p197_p6, %p196_p4 }
   0xe   : > { %p261_p10 = pnand %p1239_p7, %p260_p8  ;;  %s175_s7 = ssub.s32 %s1778_s24, %s2181_s29 }
   0xf   : > { %s180_s8 = sadd.s32 1, %s1762_s20  ;;  %p178_p11 = scmp.eq.s32.totalorder %s175_s7, 0 }
  0x10   : > { %264 = sbr.rel (%p261_p10) target bundleno = 602 (0x25a), region = 40  ;;  %s2162_s10 = sand.u32 (!%p261_p10), 1, %s1758_s19  }
  0x11   : > { %s1891_s9 = scalar_select %p178_p11, %s1762_s20, %s180_s8  }
  0x12   : > { %s1241_s11 = sshll.u32 (!%p261_p10), %s1766_s21, 3  ;;  %s1240_s12 = sshll.u32 (!%p261_p10), %s2162_s10, 7 }
  0x13   : > { %p312_p12 = scmp.lt.s32.totalorder (!%p261_p10), %s1770_s22, 1  ;;  %p314_p13 = scmp.lt.s32.totalorder (!%p261_p10), %s1241_s11, 31 }
  0x14   : > { %s1904_s8 = scalar_lea.vmem (!%p261_p10), [#allocation4], %s1240_s12  ;;  %p1243_p0 = scmp.ne.s32.totalorder (!%p261_p10), %s1766_s21, 0 }
  0x15   : > { %s313_s13 = scalar_select %p312_p12, %s1770_s22, 1 }
  0x16   : > { %s2183_s11 = smov (!%p314_p13, %s1241_s11), 31 }
  0x17   : > { %s1565_s14 = smul.u32 96, %s313_s13 }
  0x18   : > { %s1564_s15 = smul.u32 3, %s2183_s11 }
  0x19   : > { %345 = sbr.rel (%p1243_p0) target bundleno = 32 (0x20), region = 44 }
  0x1a   : > { %s318_s16 = sadd.s32 %s1565_s14, %s1564_s15 }
  0x1b   : > { %s1242_s17 = sshll.u32 %s318_s16, 2 }
  0x1c   : > { %s1902_s7 = scalar_lea.vmem %s2156_s0, %s1242_s17 }
  0x1e   : > { %v1788_v0 = vmov 0.0  }
  0x1f   : > { %346 = vst [vmem:[#allocation2] sm:$0x1] %v1788_v0  ;;  %347 = vst [vmem:[#allocation3] sm:$0x1] %v1788_v0 }
  0x20 PF: > { %v1650_v1 = vld [vmem:[%s2157_s1 + $0x78] sm:$0xff]   ;;  %v1652_v3 = vld [vmem:[%s2157_s1 + $0x70] sm:$0xff]   ;;  %v1654_v5 = vld [vmem:[%s2157_s1 + $0x68] sm:$0xff]   ;;  %vm568_vm0 = vcmask 261120   ;;  %s1278_s13 = sshll.u32 %s1766_s21, 6  ;;  %p1288_p1 = scmp.ne.s32.totalorder %s1766_s21, 3 }
  0x21   : > { %v1651_v2 = vld [vmem:[%s2157_s1 + $0x38] sm:$0xff]   ;;  %1386 = vmatprep.subr.bf16.mxu0 %v1650_v1  ;;  %1548 = vmatprep.subr.bf16.mxu1 %v1650_v1  ;;  %v1653_v4 = vld [vmem:[%s2157_s1 + $0x30] sm:$0xff]   ;;  %v1655_v6 = vld [vmem:[%s2157_s1 + $0x28] sm:$0xff]   ;;  %s784_s14 = sshra.s32 %s1278_s13, 3 }
  0x22   : > { %1387 = vmatpush3.bf16.msra.mxu0 %v1651_v2  ;;  %1556 = vmatpush3.bf16.msra.mxu1 %v1651_v2  ;;  %v1656_v7 = vld [vmem:[%s2157_s1 + $0x60] sm:$0xff]   ;;  %v1658_v9 = vld [vmem:[%s2157_s1 + $0x58] sm:$0xff]   ;;  %v1660_v11 = vld [vmem:[%s2157_s1 + $0x50] sm:$0xff]  }
  0x23   : > { %1388 = vmatprep.subr.bf16.mxu0 %v1652_v3  ;;  %1549 = vmatprep.subr.bf16.mxu1 %v1652_v3  ;;  %v1657_v8 = vld [vmem:[%s2157_s1 + $0x20] sm:$0xff]   ;;  %v1659_v10 = vld [vmem:[%s2157_s1 + $0x18] sm:$0xff]   ;;  %v1661_v14 = vld [vmem:[%s2157_s1 + $0x10] sm:$0xff]  }
  0x24   : > { %v1668_v12 = vld [vmem:[%s1902_s7 + $0x4] ss:$12 sps:$4 sm:$0xff]   ;;  %v1671_v13 = vld [vmem:[%s1902_s7 + $0x4c] ss:$12 sps:$4 sm:$0xff]   ;;  %v1669_v21 = vld [vmem:[%s1902_s7 + $0x48] ss:$12 sps:$4 sm:$0xff]  }
  0x25   : > { %v1662_v15 = vld [vmem:[%s2157_s1 + $0x48] sm:$0xff]   ;;  %613 = vmatprep.mubr.bf16.mxu0 %v1668_v12  ;;  %637 = vmatprep.mubr.bf16.mxu1 %v1671_v13  ;;  %v1664_v17 = vld [vmem:[%s2157_s1 + $0x40] sm:$0xff]   ;;  %v1682_v29 = vld [vmem:[%s1902_s7 + $0x30] ss:$12 sps:$4 sm:$0xff]  }
  0x26   : > { %1389 = vmatpush3.bf16.msra.mxu0 %v1653_v4  ;;  %1557 = vmatpush3.bf16.msra.mxu1 %v1653_v4  ;;  %v1663_v16 = vld [vmem:[%s2157_s1 + $0x8] sm:$0xff]   ;;  %v1665_v18 = vld [vmem:[%s2157_s1] sm:$0xff]   ;;  %v1683_v30 = vld [vmem:[%s1902_s7 + $0x50] ss:$12 sps:$4 sm:$0xff]  }
  0x27   : > { %1390 = vmatprep.subr.bf16.mxu0 %v1654_v5  ;;  %1550 = vmatprep.subr.bf16.mxu1 %v1654_v5  ;;  %v1672_v19 = vld [vmem:[%s2157_s1 + $0x88] sm:$0xff]   ;;  %v1673_v23 = vld [vmem:[%s2157_s1 + $0x80] sm:$0xff]  }
  0x28   : > { %v1666_v20 = vld [vmem:[%s1902_s7] ss:$12 sps:$4 sm:$0xff]   ;;  %v1674_v22 = vld [vmem:[%s1902_s7 + $0x1c] ss:$12 sps:$4 sm:$0xff]   ;;  %v1677_v25 = vld [vmem:[%s1902_s7 + $0x18] ss:$12 sps:$4 sm:$0xff]  }
  0x29   : > { %v1676_v24 = vld [vmem:[%s1902_s7 + $0x8] ss:$12 sps:$4 sm:$0xff]   ;;  %v1678_v26 = vld [vmem:[%s1902_s7 + $0x20] ss:$12 sps:$4 sm:$0xff]   ;;  %v1681_v28 = vld [vmem:[%s1902_s7 + $0x38] ss:$12 sps:$4 sm:$0xff]  }
  0x2a   : > { %1391 = vmatpush3.bf16.msra.mxu0 %v1655_v6  ;;  %1558 = vmatpush3.bf16.msra.mxu1 %v1655_v6  ;;  %v1679_v27 = vld [vmem:[%s1902_s7 + $0x34] ss:$12 sps:$4 sm:$0xff]   ;;  %s1287_s7 = sshll.u32 %s784_s14, 2  ;;  %s2074_s14 = smov (!%p1288_p1), 0  }
  0x2b   : > { %1392 = vmatprep.subr.bf16.mxu0 %v1656_v7  ;;  %1551 = vmatprep.subr.bf16.mxu1 %v1656_v7  ;;  %s1979_s12 = scalar_lea.vmem %s1904_s8, %s1287_s7 [#allocation4] }
  0x2e   : > { %1393 = vmatpush3.bf16.msra.mxu0 %v1657_v8  ;;  %1559 = vmatpush3.bf16.msra.mxu1 %v1657_v8 }
  0x2f   : > { %1394 = vmatprep.subr.bf16.mxu0 %v1658_v9  ;;  %1552 = vmatprep.subr.bf16.mxu1 %v1658_v9 }
  0x32   : > { %1395 = vmatpush3.bf16.msra.mxu0 %v1659_v10  ;;  %1560 = vmatpush3.bf16.msra.mxu1 %v1659_v10 }
  0x33   : > { %1396 = vmatprep.subr.bf16.mxu0 %v1660_v11  ;;  %1553 = vmatprep.subr.bf16.mxu1 %v1660_v11 }
  0x36   : > { %1397 = vmatpush3.bf16.msra.mxu0 %v1661_v14  ;;  %1561 = vmatpush3.bf16.msra.mxu1 %v1661_v14 }
  0x37   : > { %1398 = vmatprep.subr.bf16.mxu0 %v1662_v15  ;;  %1554 = vmatprep.subr.bf16.mxu1 %v1662_v15 }
  0x3a   : > { %1399 = vmatpush3.bf16.msra.mxu0 %v1663_v16  ;;  %1562 = vmatpush3.bf16.msra.mxu1 %v1663_v16 }
  0x3b   : > { %1400 = vmatprep.subr.bf16.mxu0 %v1664_v17  ;;  %1555 = vmatprep.subr.bf16.mxu1 %v1664_v17 }
  0x3e   : > { %1401 = vmatpush3.bf16.msra.mxu0 %v1665_v18  ;;  %1563 = vmatpush3.bf16.msra.mxu1 %v1665_v18 }
  0x3f   : > { %1466 = vmatprep.subr.bf16.mxu1 %v1672_v19 }
  0x41   : > { %614 = vmatmul.mubr.bf16.vlgmr.msra.gmra.mxu0 %v1666_v20  ;;  %638 = vmatmul.mubr.bf16.vlgmr.msra.gmra.mxu1 %v1669_v21 }
  0x42   : > { %1467 = vmatpush3.bf16.msra.mxu1 %v1672_v19  ;;  %621 = vmatprep.mubr.bf16.mxu0 %v1674_v22 }
  0x43   : > { %1468 = vmatprep.subr.bf16.mxu1 %v1673_v23  ;;  %1470 = vmatprep.mubr.msk.bf16.mxu1 %vm568_vm0, %v1676_v24 }
  0x46   : > { %1469 = vmatpush3.bf16.msra.mxu1 %v1673_v23 }
  0x49   : > { %622 = vmatmul.mubr.bf16.gmra.mxu0 %v1677_v25  ;;  %1471 = vmatmul.mubr.msk.bf16.vlgmr.msra.gmra.mxu1 %vm568_vm0, %v1678_v26 }
  0x4a   : > { %629 = vmatprep.mubr.bf16.mxu0 %v1679_v27  ;;  %1474 = vmatprep.mubr.msk.bf16.mxu1 %vm568_vm0, %v1681_v28 }
  0x51   : > { %630 = vmatmul.mubr.bf16.gmra.mxu0 %v1682_v29  ;;  %1475 = vmatmul.mubr.msk.bf16.gmra.mxu1 %vm568_vm0, %v1683_v30 }
 0x101   : > { %v1402_v31 = vpop.f32.mrf.mxu0  ;;  %v1420_v32 = vpop.f32.mrf.mxu1 }
 0x103   : > { %v1403_v33 = vpop.f32.mrf.mxu0  ;;  %v1421_v34 = vpop.f32.mrf.mxu1 }
 0x104   : > { %v1404_v41 = vadd.f32 %v1403_v33, %v1402_v31  ;;  %v1422_v61 = vadd.f32 %v1421_v34, %v1420_v32 }
 0x105   : > { %v1405_v35 = vpop.f32.mrf.mxu0  ;;  %v1423_v36 = vpop.f32.mrf.mxu1 }
 0x107   : > { %v1406_v37 = vpop.f32.mrf.mxu0  ;;  %v1424_v38 = vpop.f32.mrf.mxu1 }
 0x108   : > { %v1407_v48 = vadd.f32 %v1406_v37, %v1405_v35  ;;  %v1425_v62 = vadd.f32 %v1424_v38, %v1423_v36 }
 0x109   : > { %v1408_v39 = vpop.f32.mrf.mxu0  ;;  %v1472_v40 = vpop.f32.mrf.mxu1 }
 0x10b   : > { %v1409_v42 = vpop.f32.mrf.mxu0  ;;  %v680_v43 = vpop.f32.mrf.mxu1 }
 0x10c   : > { %v1410_v44 = vadd.f32 %v1409_v42, %v1408_v39  ;;  %v681_v45 = vadd.f32 %v1404_v41, %v680_v43  ;;  %v711_v42 = vld [vmem:[#allocation2] sm:$0x1] }
 0x10d   : > { %v1411_v46 = vpop.f32.mrf.mxu0  ;;  %v1473_v47 = vpop.f32.mrf.mxu1 }
 0x10e   : > { %v689_v51 = vadd.f32 %v1472_v40, %v1410_v44  ;;  %v728_v54 = vmul.f32 %v681_v45, %v681_v45 }
 0x10f   : > { %v1412_v49 = vpop.f32.mrf.mxu0  ;;  %v683_v50 = vpop.f32.mrf.mxu1 }
 0x110   : > { %v1413_v52 = vadd.f32 %v1412_v49, %v1411_v46  ;;  %v684_v53 = vadd.f32 %v1407_v48, %v683_v50  ;;  %v730_v1 = vmul.f32 %v689_v51, %v689_v51 }
 0x111   : > { %v1414_v55 = vpop.f32.mrf.mxu0  ;;  %v1476_v56 = vpop.f32.mrf.mxu1 }
 0x112   : > { %v692_v57 = vadd.f32 %v1473_v47, %v1413_v52  ;;  %v712_v58 = vadd.f32 %v684_v53, %v681_v45  ;;  %v729_v59 = vmul.f32 %v684_v53, %v684_v53  ;;  %v1324_v60 = vpack.c.bf16 %v684_v53, %v681_v45  ;;  %v727_v45 = vld [vmem:[#allocation3] sm:$0x1] }
 0x113   : > { %v1415_v63 = vpop.f32.mrf.mxu0  ;;  %v696_v0 = vpop.f32.mrf.mxu1  ;;  %v705_v5 = vadd.f32 %v1476_v56, %v1422_v61 }
 0x114   : > { %v1329_v2 = vpack.c.bf16 %v692_v57, %v689_v51  ;;  %v713_v3 = vadd.f32 %v712_v58, %v689_v51  ;;  %v736_v4 = vadd.f32 %v729_v59, %v728_v54  ;;  %1325 = vst [vmem:[%s1979_s12] sm:$0xff] %v1324_v60   ;;  %v1416_v6 = vadd.f32 %v1415_v63, %v1414_v55 }
 0x115   : > { %v1417_v7 = vpop.f32.mrf.mxu0  ;;  %v1477_v8 = vpop.f32.mrf.mxu1  ;;  %v731_v9 = vmul.f32 %v692_v57, %v692_v57  ;;  %v734_v26 = vmul.f32 %v705_v5, %v705_v5 }
 0x116   : > { %1377 = vst [vmem:[%s1979_s12 + $0x8] sm:$0xff] %v1329_v2   ;;  %v737_v10 = vadd.f32 %v736_v4, %v730_v1  ;;  %v714_v11 = vadd.f32 %v713_v3, %v692_v57  ;;  %v708_v12 = vadd.f32 %v1477_v8, %v1425_v62  ;;  %v697_v13 = vadd.f32 %v1416_v6, %v696_v0 }
 0x117   : > { %v1418_v14 = vpop.f32.mrf.mxu0  ;;  %v699_v19 = vpop.f32.mrf.mxu1 }
 0x118   : > { %v738_v15 = vadd.f32 %v737_v10, %v731_v9  ;;  %v1339_v16 = vpack.c.bf16 %v708_v12, %v705_v5  ;;  %v1419_v17 = vadd.f32 %v1418_v14, %v1417_v7  ;;  %v732_v18 = vmul.f32 %v697_v13, %v697_v13 }
 0x119   : > { %v715_v20 = vadd.f32 %v714_v11, %v697_v13  ;;  %v735_v29 = vmul.f32 %v708_v12, %v708_v12 }
 0x11a   : > { %1379 = vst [vmem:[%s1979_s12 + $0x18] sm:$0xff] %v1339_v16   ;;  %v700_v21 = vadd.f32 %v1419_v17, %v699_v19  ;;  %v739_v22 = vadd.f32 %v738_v15, %v732_v18 }
 0x11c   : > { %v716_v23 = vadd.f32 %v715_v20, %v700_v21  ;;  %v733_v24 = vmul.f32 %v700_v21, %v700_v21  ;;  %v1334_v25 = vpack.c.bf16 %v700_v21, %v697_v13 }
 0x11e   : > { %v717_v27 = vadd.f32 %v716_v23, %v705_v5  ;;  %v740_v28 = vadd.f32 %v739_v22, %v733_v24  ;;  %1378 = vst [vmem:[%s1979_s12 + $0x10] sm:$0xff] %v1334_v25  }
 0x120   : > { %v718_v30 = vadd.f32 %v717_v27, %v708_v12  ;;  %v741_v31 = vadd.f32 %v740_v28, %v734_v26 }
 0x122   : > { %v719_v32 = vrot.slane %v718_v30, 4  ;;  %v742_v33 = vadd.f32 %v741_v31, %v735_v29 }
 0x124   : > { %v720_v34 = vadd.f32 %v719_v32, %v718_v30  ;;  %v743_v35 = vrot.slane %v742_v33, 4 }
 0x126   : > { %v721_v36 = vrot.slane %v720_v34, 2  ;;  %v744_v37 = vadd.f32 %v743_v35, %v742_v33 }
 0x128   : > { %v722_v38 = vadd.f32 %v721_v36, %v720_v34  ;;  %v745_v39 = vrot.slane %v744_v37, 2 }
 0x12a   : > { %v723_v40 = vrot.slane %v722_v38, 1  ;;  %v746_v41 = vadd.f32 %v745_v39, %v744_v37 }
 0x12c   : > { %v724_v43 = vadd.f32 %v723_v40, %v722_v38  ;;  %v747_v44 = vrot.slane %v746_v41, 1 }
 0x12e   : > { %v725_v46 = vadd.f32 %v724_v43, %v711_v42  ;;  %v748_v47 = vadd.f32 %v747_v44, %v746_v41  ;;  %799 = sbr.rel (%p1288_p1) target bundleno = 577 (0x241), region = 48 }
 0x130   : > { %726 = vst [vmem:[#allocation2] sm:$0x1] %v725_v46  ;;  %v749_v48 = vadd.f32 %v748_v47, %v727_v45 }
 0x132   : > { %750 = vst [vmem:[#allocation3] sm:$0x1] %v749_v48 }
 0x133   : > { %v819_v49 = vld [vmem:[%s2158_s2 + $0x78] sm:$0xff]  ;;  %v1789_v50 = vmov 0.0   ;;  %v818_v51 = vld [vmem:[%s2158_s2 + $0x70] sm:$0xff]  ;;  %v817_v52 = vld [vmem:[%s2158_s2 + $0x68] sm:$0xff]  ;;  %vm1790_vm1 = vmmov 0  }
 0x134   : > { %1478 = vmatprep.subr.mxu0 %v1789_v50  ;;  %1513 = vmatprep.subr.mxu1 %v1789_v50  ;;  %v816_v53 = vld [vmem:[%s2158_s2 + $0x60] sm:$0xff]  ;;  %v815_v54 = vld [vmem:[%s2158_s2 + $0x58] sm:$0xff]  ;;  %v814_v55 = vld [vmem:[%s2158_s2 + $0x50] sm:$0xff] }
 0x135   : > { %1479 = vmatpush3.msra.mxu0 %v819_v49  ;;  %1514 = vmatpush3.msra.mxu1 %v819_v49  ;;  %v813_v56 = vld [vmem:[%s2158_s2 + $0x48] sm:$0xff]  ;;  %v812_v57 = vld [vmem:[%s2158_s2 + $0x40] sm:$0xff]  ;;  %v811_v58 = vld [vmem:[%s2158_s2 + $0x38] sm:$0xff] }
 0x136   : > { %1480 = vmatprep.subr.mxu0 %v1789_v50  ;;  %1515 = vmatprep.subr.mxu1 %v1789_v50  ;;  %v810_v59 = vld [vmem:[%s2158_s2 + $0x30] sm:$0xff]  ;;  %v809_v60 = vld [vmem:[%s2158_s2 + $0x28] sm:$0xff]  ;;  %v808_v61 = vld [vmem:[%s2158_s2 + $0x20] sm:$0xff] }
 0x137   : > { %1481 = vmatpush3.msra.mxu0 %v818_v51  ;;  %1516 = vmatpush3.msra.mxu1 %v818_v51  ;;  %v807_v62 = vld [vmem:[%s2158_s2 + $0x18] sm:$0xff]  ;;  %v806_v63 = vld [vmem:[%s2158_s2 + $0x10] sm:$0xff]  ;;  %v805_v0 = vld [vmem:[%s2158_s2 + $0x8] sm:$0xff] }
 0x138   : > { %1482 = vmatprep.subr.mxu0 %v1789_v50  ;;  %1517 = vmatprep.subr.mxu1 %v1789_v50  ;;  %v800_v1 = vld [vmem:[#allocation2] sm:$0x1] }
 0x139   : > { %1483 = vmatpush3.msra.mxu0 %v817_v52  ;;  %1518 = vmatpush3.msra.mxu1 %v817_v52  ;;  %v802_v2 = vld [vmem:[#allocation3] sm:$0x1]  ;;  %v801_v4 = vmul.f32 0.00390625, %v800_v1  ;;  %v965_v14 = vld [vmem:[%s2159_s3] sm:$0x1] }
 0x13a   : > { %1484 = vmatprep.subr.mxu0 %v1789_v50  ;;  %1519 = vmatprep.subr.mxu1 %v1789_v50  ;;  %v804_v3 = vld [vmem:[%s2158_s2] sm:$0xff]  ;;  %v803_v5 = vmul.f32 0.00390625, %v802_v2 }
 0x13b   : > { %1485 = vmatpush3.msra.mxu0 %v816_v53  ;;  %1520 = vmatpush3.msra.mxu1 %v816_v53  ;;  %v967_v17 = vld [vmem:[%s2160_s4] sm:$0x1] }
 0x13c   : > { %1486 = vmatprep.subr.mxu0 %v1789_v50  ;;  %1521 = vmatprep.subr.mxu1 %v1789_v50 }
 0x13d   : > { %1487 = vmatpush3.msra.mxu0 %v815_v54  ;;  %1522 = vmatpush3.msra.mxu1 %v815_v54 }
 0x13e   : > { %1488 = vmatprep.subr.mxu0 %v1789_v50  ;;  %1523 = vmatprep.subr.mxu1 %v1789_v50 }
 0x13f   : > { %1489 = vmatpush3.msra.mxu0 %v814_v55  ;;  %1524 = vmatpush3.msra.mxu1 %v814_v55 }
 0x140   : > { %1490 = vmatprep.subr.mxu0 %v1789_v50  ;;  %1525 = vmatprep.subr.mxu1 %v1789_v50 }
 0x141   : > { %1491 = vmatpush3.msra.mxu0 %v813_v56  ;;  %1526 = vmatpush3.msra.mxu1 %v813_v56 }
 0x142   : > { %1492 = vmatprep.subr.mxu0 %v1789_v50  ;;  %1527 = vmatprep.subr.mxu1 %v1789_v50 }
 0x143   : > { %1493 = vmatpush3.msra.mxu0 %v812_v57  ;;  %1528 = vmatpush3.msra.mxu1 %v812_v57 }
 0x144   : > { %1494 = vmatprep.subr.mxu0 %v1789_v50  ;;  %1529 = vmatprep.subr.mxu1 %v1789_v50 }
 0x145   : > { %1495 = vmatpush3.msra.mxu0 %v811_v58  ;;  %1530 = vmatpush3.msra.mxu1 %v811_v58 }
 0x146   : > { %1496 = vmatprep.subr.mxu0 %v1789_v50  ;;  %1531 = vmatprep.subr.mxu1 %v1789_v50 }
 0x147   : > { %1497 = vmatpush3.msra.mxu0 %v810_v59  ;;  %1532 = vmatpush3.msra.mxu1 %v810_v59 }
 0x148   : > { %1498 = vmatprep.subr.mxu0 %v1789_v50  ;;  %1533 = vmatprep.subr.mxu1 %v1789_v50 }
 0x149   : > { %1499 = vmatpush3.msra.mxu0 %v809_v60  ;;  %1534 = vmatpush3.msra.mxu1 %v809_v60 }
 0x14a   : > { %1500 = vmatprep.subr.mxu0 %v1789_v50  ;;  %1535 = vmatprep.subr.mxu1 %v1789_v50 }
 0x14b   : > { %1501 = vmatpush3.msra.mxu0 %v808_v61  ;;  %1536 = vmatpush3.msra.mxu1 %v808_v61 }
 0x14c   : > { %1502 = vmatprep.subr.mxu0 %v1789_v50  ;;  %1537 = vmatprep.subr.mxu1 %v1789_v50 }
 0x14d   : > { %1503 = vmatpush3.msra.mxu0 %v807_v62  ;;  %1538 = vmatpush3.msra.mxu1 %v807_v62 }
 0x14e   : > { %1504 = vmatprep.subr.mxu0 %v1789_v50  ;;  %1539 = vmatprep.subr.mxu1 %v1789_v50 }
 0x14f   : > { %1505 = vmatpush3.msra.mxu0 %v806_v63  ;;  %1540 = vmatpush3.msra.mxu1 %v806_v63 }
 0x150   : > { %1506 = vmatprep.subr.mxu0 %v1789_v50  ;;  %1541 = vmatprep.subr.mxu1 %v1789_v50 }
 0x151   : > { %1507 = vmatpush3.msra.mxu0 %v805_v0  ;;  %1542 = vmatpush3.msra.mxu1 %v805_v0 }
 0x152   : > { %1508 = vmatprep.subr.mxu0 %v1789_v50  ;;  %1543 = vmatprep.subr.mxu1 %v1789_v50 }
 0x153   : > { %1509 = vmatpush3.msra.mxu0 %v804_v3  ;;  %1510 = vmatprep.mubr.msk.f32.mxu0 %vm1790_vm1, %v1789_v50 }
 0x154   : > { %1544 = vmatpush3.msra.mxu1 %v804_v3  ;;  %1545 = vmatprep.mubr.msk.f32.mxu1 %vm1790_vm1, %v1789_v50 }
 0x155   : > { %1511 = vmatmul.mubr.f32.vlgmr.msra.gmra.mxu0 %v801_v4  ;;  %1546 = vmatmul.mubr.f32.vlgmr.msra.gmra.mxu1 %v803_v5 }
 0x215   : > { %v886_v6 = vpop.f32.mrf.mxu0  ;;  %v956_v7 = vpop.f32.mrf.mxu1 }
 0x216   : > { %v960_v8 = vmul.f32 %v886_v6, %v886_v6 }
 0x217   : > { %v1512_v9 = vpop.f32.mrf.mxu0  ;;  %v1547_v10 = vpop.f32.mrf.mxu1 }
 0x218   : > { %v961_v11 = vsub.f32 %v956_v7, %v960_v8 }
 0x21a   : > { %v962_v12 = vmax.f32 %v961_v11, 0.0 }
 0x21c   : > { %v963_v13 = vadd.f32 1e-05, %v962_v12 }
 0x21e   : > { %1684 = vrsqrt.f32 %v963_v13 }
 0x22b   : > { %v1685_v15 = vpop.eup %1684 }
 0x22c   : > { %v966_v16 = vmul.f32 %v1685_v15, %v965_v14 }
 0x22e   : > { %v968_v18 = vmul.f32 %v966_v16, %v886_v6 }
 0x230   : > { %v969_v19 = vsub.f32 %v967_v17, %v968_v18 }
 0x231 LB: >> { %v997_v20 = vlaneseq  ;;  %s1289_s7 = sshll.u32 %s1786_s14, 6  ;;  %s975_s14 = sadd.s32 1, %s1786_s14   ;;  %s1786_s14 = sphi %s2074_s14, %s975_s14  }
 0x232   : >> { %s977_s12 = sshra.s32 %s1289_s7, 3  ;;  %p972_p2 = scmp.ge.s32.totalorder %s975_s14, 4  }
 0x233   : >> { %v998_v21 = vshrl.u32 %v997_v20, 7  ;;  %s1290_s15 = sshll.u32 %s977_s12, 2 }
 0x234   : >> { %s2081_s16 = scalar_lea.vmem %s1904_s8, %s1290_s15 [#allocation4] }
 0x235   : >> { %v999_v22 = vsub.s32 0, %v998_v21  ;;  %v1342_v23 = vld [vmem:[%s2081_s16] sm:$0xff]   ;;  %v1380_v26 = vld [vmem:[%s2081_s16 + $0x8] sm:$0xff]   ;;  %v1381_v27 = vld [vmem:[%s2081_s16 + $0x10] sm:$0xff]  }
 0x236   : >> { %v1343_v28 = vunpack.c.l.bf16 %v1342_v23  ;;  %v1344_v29 = vunpack.c.h.bf16 %v1342_v23  ;;  %v1347_v30 = vunpack.c.l.bf16 %v1380_v26  ;;  %v1348_v31 = vunpack.c.h.bf16 %v1380_v26  ;;  %v1382_v32 = vld [vmem:[%s2081_s16 + $0x18] sm:$0xff]  }
 0x237   : >> { %v1000_v24 = vrot.slane %v966_v16, %v999_v22  ;;  %v1013_v25 = vrot.slane %v969_v19, %v999_v22  ;;  %v1351_v33 = vunpack.c.l.bf16 %v1381_v27  ;;  %v1352_v34 = vunpack.c.h.bf16 %v1381_v27 }
 0x238   : >> { %v1355_v35 = vunpack.c.l.bf16 %v1382_v32  ;;  %v1356_v36 = vunpack.c.h.bf16 %v1382_v32 }
 0x239   : >> { %v1001_v37 = vmul.f32 %v1343_v28, %v1000_v24  ;;  %v1002_v38 = vmul.f32 %v1344_v29, %v1000_v24  ;;  %v1003_v39 = vmul.f32 %v1347_v30, %v1000_v24  ;;  %v1004_v40 = vmul.f32 %v1348_v31, %v1000_v24 }
 0x23a   : >> { %v1005_v41 = vmul.f32 %v1351_v33, %v1000_v24  ;;  %v1006_v42 = vmul.f32 %v1352_v34, %v1000_v24  ;;  %v1007_v43 = vmul.f32 %v1355_v35, %v1000_v24  ;;  %v1008_v44 = vmul.f32 %v1356_v36, %v1000_v24 }
 0x23b   : >> { %v1015_v45 = vadd.f32 %v1013_v25, %v1001_v37  ;;  %v1016_v46 = vadd.f32 %v1013_v25, %v1002_v38  ;;  %v1017_v47 = vadd.f32 %v1013_v25, %v1003_v39  ;;  %v1018_v48 = vadd.f32 %v1013_v25, %v1004_v40 }
 0x23c   : >> { %v1019_v49 = vadd.f32 %v1013_v25, %v1005_v41  ;;  %v1020_v50 = vadd.f32 %v1013_v25, %v1006_v42  ;;  %v1021_v51 = vadd.f32 %v1013_v25, %v1007_v43  ;;  %v1022_v52 = vadd.f32 %v1013_v25, %v1008_v44  ;;  %974 = sbr.rel (!%p972_p2) target bundleno = 561 (0x231), region = 104 }
 0x23d   : >> { %v1360_v53 = vpack.c.bf16 %v1016_v46, %v1015_v45  ;;  %v1365_v54 = vpack.c.bf16 %v1018_v48, %v1017_v47 }
 0x23e   : >> { %v1370_v55 = vpack.c.bf16 %v1020_v50, %v1019_v49  ;;  %v1375_v56 = vpack.c.bf16 %v1022_v52, %v1021_v51 }
 0x23f   : >> { %1361 = vst [vmem:[%s2081_s16] sm:$0xff] %v1360_v53   ;;  %1383 = vst [vmem:[%s2081_s16 + $0x8] sm:$0xff] %v1365_v54  }
 0x240   : >> { %1384 = vst [vmem:[%s2081_s16 + $0x10] sm:$0xff] %v1370_v55   ;;  %1385 = vst [vmem:[%s2081_s16 + $0x18] sm:$0xff] %v1375_v56  }
 0x241 PF: > { %s1320_s29 = sshll.u32 %s1770_s22, 11  ;;  %s1078_s26 = sshll.u32 %s1904_s8, 4  ;;  %s2101_s26 = int_to_ptr.vmem [resolvable:$true] %s1078_s26 }
 0x242   : > { %s2098_s17 = scalar_lea.hbm %s2161_s5, %s1320_s29  ;;  %s2167_s27 = sand.u32 1, %s1758_s19  }
 0x243   : > { %s2105_s11 = scalar_lea.sflag [#allocation5], %s2167_s27  ;;  %s1686_s13 = scalar_lea.vmem %s2101_s26, 2048 }
 0x244   : > { %p1687_p4 = scmp.ne.s32.totalorder %s2101_s26, %s1686_s13  ;;  %s1791_s22 = smov [#allocation4]  }
 0x245   : > { %s1690_s14 = sshll.u32 %s1791_s22, 4  ;;  %s1691_s14 = int_to_ptr.vmem [resolvable:$false] %s1690_s14 }
 0x246   : > { %p1688_p5 = pnand %p1687_p4, %p1873_p3  ;;  %s1692_s7 = scalar_lea.vmem %s1691_s14, 4096 }
 0x247   : > { %p1693_p7 = scmp.lt.s32.totalorder %s2101_s26, %s1691_s14  ;;  %p1694_p8 = scmp.lt.s32.totalorder %s1692_s7, %s1686_s13 }
 0x248   : > { %p1689_p6 = pneg %p1688_p5 }
 0x249   : > { %p1695_p10 = por %p1694_p8, %p1693_p7 }
 0x24b   : > { %p1696_p11 = pnand %p1695_p10, %p1689_p6 }
 0x24d   : > { %1699 = shalt.err (!%p1696_p11)
}
 0x24e   : > { %s1700_s8 = scalar_lea.hbm %s2098_s17, 2048  ;;  %s1704_s16 = scalar_lea.hbm %s2161_s5, 4096 }
 0x24f   : > { %p1701_p12 = scmp.ne.s32.totalorder %s2098_s17, %s1700_s8  ;;  %p1705_p1 = scmp.lt.s32.totalorder %s2098_s17, %s2161_s5 }
 0x250   : > { %p1706_p2 = scmp.lt.s32.totalorder %s1704_s16, %s1700_s8 }
 0x251   : > { %p1702_p13 = pnand %p1701_p12, %p1873_p3 }
 0x252   : > { %p1707_p4 = por %p1706_p2, %p1705_p1 }
 0x253   : > { %p1703_p0 = pneg %p1702_p13 }
 0x255   : > { %p1708_p5 = pnand %p1707_p4, %p1703_p0 }
 0x257   : > { %1711 = shalt.err (!%p1708_p5)
}
 0x258   : > { %s1792_s21 = smov 64   ;;  %s1793_s27 = smov 4  }
 0x259   : > { %1566 = dma.vmem_to_hbm [thread:$0]  (%p1873_p3), %s2101_s26, 2048, %s2098_s17, %s2105_s11, %s1792_s21, %s1792_s21, %s1793_s27  }
 0x25a PF: > { %p1572_p6 = scmp.ge.s32.totalorder %s1782_s25, 2  ;;  %s1093_s13 = sand.u32 1, %s1754_s18  }
 0x25b   : > { %s1094_s22 = scalar_lea.sflag [#allocation5], %s1093_s13 }
 0x25c   : > { %p1569_p7 = pnand %p1572_p6, %p1883_p9 }
 0x25e   : > { %p1570_p8 = pneg %p1569_p7 }
 0x260   : > { %1749 = dma.done.wait (%p1570_p8), %s1094_s22, 2048  }
 0x261   : > { %1751 = vsyncadd (%p1570_p8), %s1094_s22, 4294965248  ;;  %s18_s25 = sadd.s32 1, %s1782_s25   ;;  %s2168_s30 = sld [smem:[#allocation7_spill]] }
 0x262   : > { %p15_p10 = scmp.ge.s32.totalorder %s18_s25, 10   ;;  %s2169_s18 = smov %s1758_s19 }
 0x263   : > { %s2170_s19 = smov %s1762_s20  ;;  %s2171_s20 = smov %s1891_s9 }
 0x264   : > { %s2172_s21 = smov %s1774_s23  ;;  %s2173_s22 = smov %s1778_s24 }
 0x265   : > { %s2174_s23 = smov %s2177_s28  ;;  %17 = sbr.rel (!%p15_p10) target bundleno = 5 (0x5), region = 115 }
 0x267   : > { %s2175_s24 = smov %s2168_s30 }
 0x26a   :  { %1099 = vsyncpa [#allocation5], 1 }
 0x26b   :  { %1101 = vsyncpa [#allocation5 + $0x1], 1 }

</bundles_post_ra>
